<compile_context>
chip_gen: v6e
topology: v6e:2x2x1
jax: 0.10.0
libtpu: 0.0.40
codegen_flags: <defaults>
</compile_context>

<pallas_src>
import functools

import jax
import jax.numpy as jnp
from jax.experimental import pallas as pl
from jax.experimental.pallas import tpu as pltpu

EPS = 1e-5
NEG_SLOPE = 0.01                 # F.leaky_relu default
NEG_INF = -1e30                  # mask value for padded vocab columns
VMEM_LIMIT_BYTES = 48 * 1024 * 1024


def _encoder_kernel(bows_ref, w0_ref, b0_ref, w1_ref, b1_ref, g1_ref, beta1_ref,
                    theta_ref, acc_ref):
    """Grid (num_vocab_tiles,): K-reduction of bows @ W0; finalize on the last tile."""
    k = pl.program_id(0)

    @pl.when(k == 0)
    def _():
        acc_ref[...] = jnp.zeros_like(acc_ref)

    # bf16 x bf16 -> f32 accumulation on the MXU.
    acc_ref[...] += jnp.dot(bows_ref[...], w0_ref[...],
                            preferred_element_type=jnp.float32)

    @pl.when(k == pl.num_programs(0) - 1)
    def _():
        # encoder.enc_0 epilogue: bias + leaky_relu (dropout = identity)
        h = acc_ref[...] + b0_ref[...]
        h = jnp.where(h > 0, h, NEG_SLOPE * h)
        # encoder.enc_1: Linear(H -> T) (dropout = identity, no nonlinearity)
        t = jnp.dot(h.astype(jnp.bfloat16), w1_ref[...],
                    preferred_element_type=jnp.float32) + b1_ref[...]
        # BatchNorm1d(topic_num): training-mode batch stats, biased variance, one pass.
        mu = jnp.mean(t, axis=0, keepdims=True)
        var = jnp.mean(t * t, axis=0, keepdims=True) - mu * mu
        theta = (t - mu) * jax.lax.rsqrt(var + EPS) * g1_ref[...] + beta1_ref[...]
        theta_ref[...] = theta.astype(theta_ref.dtype)


def _decoder_kernel(theta_ref, wd_ref, g2_ref, beta2_ref, out_ref, m_sc, l_sc,
                    *, vocab_size, tile_v, masked):
    """Grid (2, num_vocab_tiles): pass 0 = online softmax stats, pass 1 = normalize."""
    p = pl.program_id(0)
    n = pl.program_id(1)

    # decoder: Linear(T -> V, bias=False), one vocab tile at a time.
    logits = jnp.dot(theta_ref[...].astype(jnp.bfloat16), wd_ref[...],
                     preferred_element_type=jnp.float32)

    # BatchNorm1d(vocab_size): per-column batch stats -> independent per vocab tile.
    mu = jnp.mean(logits, axis=0, keepdims=True)
    var = jnp.mean(logits * logits, axis=0, keepdims=True) - mu * mu
    z = (logits - mu) * jax.lax.rsqrt(var + EPS) * g2_ref[...] + beta2_ref[...]

    if masked:  # padded vocab columns must not contribute to the softmax
        col = jax.lax.broadcasted_iota(jnp.int32, (1, tile_v), 1) + n * tile_v
        z = jnp.where(col < vocab_size, z, NEG_INF)

    @pl.when((p == 0) & (n == 0))
    def _():
        m_sc[...] = jnp.full(m_sc.shape, -jnp.inf, dtype=m_sc.dtype)
        l_sc[...] = jnp.zeros(l_sc.shape, dtype=l_sc.dtype)

    @pl.when(p == 0)
    def _():
        m_prev = m_sc[...]
        m_new = jnp.maximum(m_prev, jnp.max(z, axis=1, keepdims=True))
        l_sc[...] = (l_sc[...] * jnp.exp(m_prev - m_new)
                     + jnp.sum(jnp.exp(z - m_new), axis=1, keepdims=True))
        m_sc[...] = m_new
        out_ref[...] = z   # placeholder write; every block is rewritten in pass 1

    @pl.when(p == 1)
    def _():
        out_ref[...] = jnp.exp(z - m_sc[...]) * pl.reciprocal(l_sc[...], approx=True)


def _round_up(x, m):
    return ((x + m - 1) // m) * m


def base_topic_neural_model_forward(bows, params, *, tile_v=2048):
    """bows: [B, V] float. Returns x_rec: [B, V] float32 (each row sums to 1)."""
    B, V = bows.shape
    H = params["w0"].shape[1]
    T = params["w1"].shape[1]

    # Vocab tile (lane-dense, multiple of 128); pad V up to a tile multiple.
    tv = min(tile_v, _round_up(V, 128))
    Vp = _round_up(V, tv)
    nv = Vp // tv
    pad = Vp - V

    f32, bf16 = jnp.float32, jnp.bfloat16
    bows_p = jnp.pad(bows.astype(f32), ((0, 0), (0, pad))).astype(bf16)
    w0 = jnp.pad(params["w0"], ((0, pad), (0, 0))).astype(bf16)
    w1 = params["w1"].astype(bf16)
    wd = jnp.pad(params["wd"], ((0, 0), (0, pad))).astype(bf16)
    b0 = params["b0"].astype(f32)
    b1 = params["b1"].astype(f32)
    bn1_g = params["bn1_g"].astype(f32)
    bn1_b = params["bn1_b"].astype(f32)
    bn2_g = jnp.pad(params["bn2_g"].astype(f32), ((0, 0), (0, pad)))
    bn2_b = jnp.pad(params["bn2_b"].astype(f32), ((0, 0), (0, pad)))

    const = lambda *_: (0, 0)  # small operands stay VMEM-resident across the grid

    # ---- kernel 1: encoder (K-reduction over vocab tiles) -> theta [B, T] ---------
    theta = pl.pallas_call(
        _encoder_kernel,
        out_shape=jax.ShapeDtypeStruct((B, T), f32),
        grid_spec=pltpu.PrefetchScalarGridSpec(
            num_scalar_prefetch=0,
            grid=(nv,),
            in_specs=[
                pl.BlockSpec((B, tv), lambda k: (0, k)),   # bows tile (streamed)
                pl.BlockSpec((tv, H), lambda k: (k, 0)),   # W0 tile   (streamed)
                pl.BlockSpec((1, H), const),               # b0
                pl.BlockSpec((H, T), const),               # W1
                pl.BlockSpec((1, T), const),               # b1
                pl.BlockSpec((1, T), const),               # bn1 gamma
                pl.BlockSpec((1, T), const),               # bn1 beta
            ],
            out_specs=pl.BlockSpec((B, T), const),
            scratch_shapes=[pltpu.VMEM((B, H), f32)],      # f32 matmul accumulator
        ),
        compiler_params=pltpu.CompilerParams(
            dimension_semantics=("arbitrary",),
            vmem_limit_bytes=VMEM_LIMIT_BYTES,
        ),
    )(bows_p, w0, b0, w1, b1, bn1_g, bn1_b)

    # ---- kernel 2: decoder + BN2 + two-pass online softmax over vocab tiles -------
    dec = functools.partial(_decoder_kernel, vocab_size=V, tile_v=tv, masked=pad > 0)
    x_rec_p = pl.pallas_call(
        dec,
        out_shape=jax.ShapeDtypeStruct((B, Vp), f32),
        grid_spec=pltpu.PrefetchScalarGridSpec(
            num_scalar_prefetch=0,
            grid=(2, nv),
            in_specs=[
                pl.BlockSpec((B, T), const),                 # theta (VMEM-resident)
                pl.BlockSpec((T, tv), lambda p, n: (0, n)),  # Wd tile (streamed)
                pl.BlockSpec((1, tv), lambda p, n: (0, n)),  # bn2 gamma tile
                pl.BlockSpec((1, tv), lambda p, n: (0, n)),  # bn2 beta tile
            ],
            out_specs=pl.BlockSpec((B, tv), lambda p, n: (0, n)),
            scratch_shapes=[pltpu.VMEM((B, 1), f32),         # running row max
                            pltpu.VMEM((B, 1), f32)],        # running row sum(exp)
        ),
        compiler_params=pltpu.CompilerParams(
            # both "arbitrary": softmax stats carry across vocab tiles in scratch
            dimension_semantics=("arbitrary", "arbitrary"),
            vmem_limit_bytes=VMEM_LIMIT_BYTES,
        ),
    )(theta, wd, bn2_g, bn2_b)

    return x_rec_p[:, :V] if pad else x_rec_p


def init_params(key, vocab_size, hidden_dim, topic_num):
    """Deterministic synthetic parameters matching the module's shapes.

    torch Linear weight [out, in] is stored pre-transposed as [in, out]."""
    ks = jax.random.split(key, 6)

    def lin_init(k, fan_in, shape):
        bound = 1.0 / jnp.sqrt(fan_in)
        return jax.random.uniform(k, shape, jnp.float32, -bound, bound)

    return {
        # encoder.enc_0 : Linear(vocab_size, hidden_dim)
        "w0": lin_init(ks[0], vocab_size, (vocab_size, hidden_dim)),
        "b0": lin_init(ks[1], vocab_size, (1, hidden_dim)),
        # encoder.enc_1 : Linear(hidden_dim, topic_num)
        "w1": lin_init(ks[2], hidden_dim, (hidden_dim, topic_num)),
        "b1": lin_init(ks[3], hidden_dim, (1, topic_num)),
        # batch_norm (topic_num)
        "bn1_g": jnp.ones((1, topic_num), jnp.float32),
        "bn1_b": jnp.zeros((1, topic_num), jnp.float32),
        # decoder : Linear(topic_num, vocab_size, bias=False)
        "wd": lin_init(ks[4], topic_num, (topic_num, vocab_size)),
        # batch_norm_final (vocab_size)
        "bn2_g": jnp.ones((1, vocab_size), jnp.float32),
        "bn2_b": jnp.zeros((1, vocab_size), jnp.float32),
    }


def reference_forward(bows, params):
    """Pure-JAX f32 reference of the same forward pass (for correctness checking)."""
    x = bows.astype(jnp.float32)
    h = x @ params["w0"] + params["b0"]
    h = jnp.where(h > 0, h, NEG_SLOPE * h)
    t = h @ params["w1"] + params["b1"]
    mu1 = t.mean(0, keepdims=True)
    var1 = ((t - mu1) ** 2).mean(0, keepdims=True)
    theta = (t - mu1) / jnp.sqrt(var1 + EPS) * params["bn1_g"] + params["bn1_b"]
    logits = theta @ params["wd"]
    mu2 = logits.mean(0, keepdims=True)
    var2 = ((logits - mu2) ** 2).mean(0, keepdims=True)
    z = (logits - mu2) / jnp.sqrt(var2 + EPS) * params["bn2_g"] + params["bn2_b"]
    return jax.nn.softmax(z, axis=1)


if __name__ == "__main__":
    # toy shapes consistent with the module config; vocab chosen NOT a multiple of 128
    # so (with tile_v=128) the run exercises multiple vocab tiles + padding/masking.
    batch, vocab_size, hidden_dim, topic_num = 8, 300, 32, 8

    key = jax.random.PRNGKey(0)
    k_bow, k_par = jax.random.split(key)

    # synthetic bag-of-words counts
    bows = jax.random.poisson(k_bow, 2.0, (batch, vocab_size)).astype(jnp.float32)
    params = init_params(k_par, vocab_size, hidden_dim, topic_num)

    x_rec = base_topic_neural_model_forward(bows, params, tile_v=128)
    x_rec = jax.block_until_ready(x_rec)

    assert x_rec.shape == (batch, vocab_size)
    # softmax rows must sum to 1 (approx EUP reciprocal => slightly loose tolerance)
    assert jnp.allclose(jnp.sum(x_rec, axis=1), 1.0, atol=1e-2)

    # compare against the f32 pure-JAX reference (bf16 matmuls => loose tolerance)
    ref = reference_forward(bows, params)
    max_err = float(jnp.max(jnp.abs(x_rec - ref)))
    assert max_err < 2e-2, f"max abs err vs reference: {max_err}"

    print("KERNEL_OK")
</pallas_src>

<mosaic_0001>
module attributes {stable_mosaic.version = 11 : i64} {
  func.func @_encoder_kernel(%arg0: i32, %arg1: memref<8x128xbf16, #tpu.memory_space<vmem>>, %arg2: memref<128x32xbf16, #tpu.memory_space<vmem>>, %arg3: memref<1x32xf32, #tpu.memory_space<vmem>>, %arg4: memref<32x8xbf16, #tpu.memory_space<vmem>>, %arg5: memref<1x8xf32, #tpu.memory_space<vmem>>, %arg6: memref<1x8xf32, #tpu.memory_space<vmem>>, %arg7: memref<1x8xf32, #tpu.memory_space<vmem>>, %arg8: memref<8x8xf32, #tpu.memory_space<vmem>>, %arg9: memref<8x32xf32, #tpu.memory_space<vmem>>) attributes {dimension_semantics = [#tpu.dimension_semantics<arbitrary>], iteration_bounds = array<i64: 3>, scalar_prefetch = 0 : i64, scratch_operands = 1 : i64, tpu.core_type = #tpu.core_type<tc>, window_params = [{transform_indices = @transform_0, window_bounds = array<i64: 8, 128>}, {transform_indices = @transform_1, window_bounds = array<i64: 128, 32>}, {pipeline_mode = #tpu.pipeline_mode<synchronous>, transform_indices = @transform_2, window_bounds = array<i64: 1, 32>}, {pipeline_mode = #tpu.pipeline_mode<synchronous>, transform_indices = @transform_3, window_bounds = array<i64: 32, 8>}, {pipeline_mode = #tpu.pipeline_mode<synchronous>, transform_indices = @transform_4, window_bounds = array<i64: 1, 8>}, {pipeline_mode = #tpu.pipeline_mode<synchronous>, transform_indices = @transform_5, window_bounds = array<i64: 1, 8>}, {pipeline_mode = #tpu.pipeline_mode<synchronous>, transform_indices = @transform_6, window_bounds = array<i64: 1, 8>}, {pipeline_mode = #tpu.pipeline_mode<synchronous>, transform_indices = @transform_7, window_bounds = array<i64: 8, 8>}]} {
    %c0_i32 = arith.constant 0 : i32
    %0 = arith.cmpi eq, %arg0, %c0_i32 : i32
    %1 = arith.extui %0 : i1 to i32
    %c0_i32_0 = arith.constant 0 : i32
    %2 = arith.cmpi ne, %1, %c0_i32_0 : i32
    scf.if %2 {
      %cst_9 = arith.constant 0.000000e+00 : f32
      %12 = vector.broadcast %cst_9 : f32 to vector<8x32xf32>
      %c0_10 = arith.constant 0 : index
      %c0_11 = arith.constant 0 : index
      %13 = vector.load %arg9[%c0_10, %c0_11] : memref<8x32xf32, #tpu.memory_space<vmem>>, vector<8x32xf32>
      tpu.vector_store %arg9[%c0_10, %c0_11], %12 {strides = array<i32>} : memref<8x32xf32, #tpu.memory_space<vmem>>, vector<8x32xf32>,
    } else {
    }
    %c0 = arith.constant 0 : index
    %c0_1 = arith.constant 0 : index
    %3 = vector.load %arg9[%c0, %c0_1] : memref<8x32xf32, #tpu.memory_space<vmem>>, vector<8x32xf32>
    %c0_2 = arith.constant 0 : index
    %c0_3 = arith.constant 0 : index
    %4 = vector.load %arg1[%c0_2, %c0_3] : memref<8x128xbf16, #tpu.memory_space<vmem>>, vector<8x128xbf16>
    %c0_4 = arith.constant 0 : index
    %c0_5 = arith.constant 0 : index
    %5 = vector.load %arg2[%c0_4, %c0_5] : memref<128x32xbf16, #tpu.memory_space<vmem>>, vector<128x32xbf16>
    %cst = arith.constant dense<0.000000e+00> : vector<8x32xf32>
    %6 = tpu.matmul %4, %5, %cst {dimension_numbers = #tpu.dot_dimension_numbers<[1], [0], [0], [1], [0, 0, 1, 1], [], []>} : vector<8x128xbf16>, vector<128x32xbf16>, vector<8x32xf32> -> vector<8x32xf32>
    %7 = arith.addf %3, %6 : vector<8x32xf32>
    %c0_6 = arith.constant 0 : index
    %c0_7 = arith.constant 0 : index
    %8 = vector.load %arg9[%c0_6, %c0_7] : memref<8x32xf32, #tpu.memory_space<vmem>>, vector<8x32xf32>
    tpu.vector_store %arg9[%c0_6, %c0_7], %7 {strides = array<i32>} : memref<8x32xf32, #tpu.memory_space<vmem>>, vector<8x32xf32>,
    %c2_i32 = arith.constant 2 : i32
    %9 = arith.cmpi eq, %arg0, %c2_i32 : i32
    %10 = arith.extui %9 : i1 to i32
    %c0_i32_8 = arith.constant 0 : i32
    %11 = arith.cmpi ne, %10, %c0_i32_8 : i32
    scf.if %11 {
      %c0_9 = arith.constant 0 : index
      %c0_10 = arith.constant 0 : index
      %12 = vector.load %arg9[%c0_9, %c0_10] : memref<8x32xf32, #tpu.memory_space<vmem>>, vector<8x32xf32>
      %c0_11 = arith.constant 0 : index
      %c0_12 = arith.constant 0 : index
      %13 = vector.load %arg3[%c0_11, %c0_12] : memref<1x32xf32, #tpu.memory_space<vmem>>, vector<1x32xf32>
      %14 = vector.broadcast %13 : vector<1x32xf32> to vector<8x32xf32>
      %15 = arith.addf %12, %14 : vector<8x32xf32>
      %cst_13 = arith.constant 0.000000e+00 : f32
      %16 = vector.broadcast %cst_13 : f32 to vector<8x32xf32>
      %17 = arith.cmpf ogt, %15, %16 : vector<8x32xf32>
      %cst_14 = arith.constant 0.00999999977 : f32
      %18 = vector.broadcast %cst_14 : f32 to vector<8x32xf32>
      %19 = arith.mulf %18, %15 : vector<8x32xf32>
      %20 = arith.select %17, %15, %19 : vector<8x32xi1>, vector<8x32xf32>
      %21 = arith.truncf %20 : vector<8x32xf32> to vector<8x32xbf16>
      %c0_15 = arith.constant 0 : index
      %c0_16 = arith.constant 0 : index
      %22 = vector.load %arg4[%c0_15, %c0_16] : memref<32x8xbf16, #tpu.memory_space<vmem>>, vector<32x8xbf16>
      %cst_17 = arith.constant dense<0.000000e+00> : vector<8x8xf32>
      %23 = tpu.matmul %21, %22, %cst_17 {dimension_numbers = #tpu.dot_dimension_numbers<[1], [0], [0], [1], [0, 0, 1, 1], [], []>} : vector<8x32xbf16>, vector<32x8xbf16>, vector<8x8xf32> -> vector<8x8xf32>
      %c0_18 = arith.constant 0 : index
      %c0_19 = arith.constant 0 : index
      %24 = vector.load %arg5[%c0_18, %c0_19] : memref<1x8xf32, #tpu.memory_space<vmem>>, vector<1x8xf32>
      %25 = vector.broadcast %24 : vector<1x8xf32> to vector<8x8xf32>
      %26 = arith.addf %23, %25 : vector<8x8xf32>
      %cst_20 = arith.constant dense<0.000000e+00> : vector<8xf32>
      %27 = vector.multi_reduction <add>, %26, %cst_20 [0] : vector<8x8xf32> to vector<8xf32>
      %28 = vector.shape_cast %27 : vector<8xf32> to vector<1x8xf32>
      %cst_21 = arith.constant 8.000000e+00 : f32
      %29 = vector.broadcast %cst_21 : f32 to vector<1x8xf32>
      %30 = arith.divf %28, %29 : vector<1x8xf32>
      %31 = arith.mulf %26, %26 : vector<8x8xf32>
      %cst_22 = arith.constant dense<0.000000e+00> : vector<8xf32>
      %32 = vector.multi_reduction <add>, %31, %cst_22 [0] : vector<8x8xf32> to vector<8xf32>
      %33 = vector.shape_cast %32 : vector<8xf32> to vector<1x8xf32>
      %cst_23 = arith.constant 8.000000e+00 : f32
      %34 = vector.broadcast %cst_23 : f32 to vector<1x8xf32>
      %35 = arith.divf %33, %34 : vector<1x8xf32>
      %36 = arith.mulf %30, %30 : vector<1x8xf32>
      %37 = arith.subf %35, %36 : vector<1x8xf32>
      %38 = vector.broadcast %30 : vector<1x8xf32> to vector<8x8xf32>
      %39 = arith.subf %26, %38 : vector<8x8xf32>
      %cst_24 = arith.constant 9.99999974E-6 : f32
      %40 = vector.broadcast %cst_24 : f32 to vector<1x8xf32>
      %41 = arith.addf %37, %40 : vector<1x8xf32>
      %42 = math.rsqrt %41 : vector<1x8xf32>
      %43 = vector.broadcast %42 : vector<1x8xf32> to vector<8x8xf32>
      %44 = arith.mulf %39, %43 : vector<8x8xf32>
      %c0_25 = arith.constant 0 : index
      %c0_26 = arith.constant 0 : index
      %45 = vector.load %arg6[%c0_25, %c0_26] : memref<1x8xf32, #tpu.memory_space<vmem>>, vector<1x8xf32>
      %46 = vector.broadcast %45 : vector<1x8xf32> to vector<8x8xf32>
      %47 = arith.mulf %44, %46 : vector<8x8xf32>
      %c0_27 = arith.constant 0 : index
      %c0_28 = arith.constant 0 : index
      %48 = vector.load %arg7[%c0_27, %c0_28] : memref<1x8xf32, #tpu.memory_space<vmem>>, vector<1x8xf32>
      %49 = vector.broadcast %48 : vector<1x8xf32> to vector<8x8xf32>
      %50 = arith.addf %47, %49 : vector<8x8xf32>
      %c0_29 = arith.constant 0 : index
      %c0_30 = arith.constant 0 : index
      %51 = vector.load %arg8[%c0_29, %c0_30] : memref<8x8xf32, #tpu.memory_space<vmem>>, vector<8x8xf32>
      tpu.vector_store %arg8[%c0_29, %c0_30], %50 {strides = array<i32>} : memref<8x8xf32, #tpu.memory_space<vmem>>, vector<8x8xf32>,
    } else {
    }
    return
  }
  func.func @transform_0(%arg0: i32) -> (i32, i32) {
    %c0_i32 = arith.constant 0 : i32
    %c0_i32_0 = arith.constant 0 : i32
    return %c0_i32, %arg0 : i32, i32
  }
  func.func @transform_1(%arg0: i32) -> (i32, i32) {
    %c0_i32 = arith.constant 0 : i32
    %c0_i32_0 = arith.constant 0 : i32
    return %arg0, %c0_i32 : i32, i32
  }
  func.func @transform_2(%arg0: i32) -> (i32, i32) {
    %c0_i32 = arith.constant 0 : i32
    %c0_i32_0 = arith.constant 0 : i32
    %c0_i32_1 = arith.constant 0 : i32
    return %c0_i32, %c0_i32_0 : i32, i32
  }
  func.func @transform_3(%arg0: i32) -> (i32, i32) {
    %c0_i32 = arith.constant 0 : i32
    %c0_i32_0 = arith.constant 0 : i32
    %c0_i32_1 = arith.constant 0 : i32
    return %c0_i32, %c0_i32_0 : i32, i32
  }
  func.func @transform_4(%arg0: i32) -> (i32, i32) {
    %c0_i32 = arith.constant 0 : i32
    %c0_i32_0 = arith.constant 0 : i32
    %c0_i32_1 = arith.constant 0 : i32
    return %c0_i32, %c0_i32_0 : i32, i32
  }
  func.func @transform_5(%arg0: i32) -> (i32, i32) {
    %c0_i32 = arith.constant 0 : i32
    %c0_i32_0 = arith.constant 0 : i32
    %c0_i32_1 = arith.constant 0 : i32
    return %c0_i32, %c0_i32_0 : i32, i32
  }
  func.func @transform_6(%arg0: i32) -> (i32, i32) {
    %c0_i32 = arith.constant 0 : i32
    %c0_i32_0 = arith.constant 0 : i32
    %c0_i32_1 = arith.constant 0 : i32
    return %c0_i32, %c0_i32_0 : i32, i32
  }
  func.func @transform_7(%arg0: i32) -> (i32, i32) {
    %c0_i32 = arith.constant 0 : i32
    %c0_i32_0 = arith.constant 0 : i32
    %c0_i32_1 = arith.constant 0 : i32
    return %c0_i32, %c0_i32_0 : i32, i32
  }
}

</mosaic_0001>

<bundles_post_ra>
// kernel: tpu_custom_call.1
= control target key start
LH: loop header
LB: loop body
LE: loop exit
PB: predicated region body
PF: predicated region fallthrough
CT: control target
= control target key end

     0   :  { %12 = vsyncpa [#allocation4], 0  ;;  %s765_s24 = smov 0   ;;  %s837_s0 = inlined_call_operand.vmem [shape: bf16[8,384], index: 0, kind: input, shape index: {}]   ;;  %s838_s1 = inlined_call_operand.vmem [shape: bf16[384,32], index: 1, kind: input, shape index: {}]   ;;  %s839_s2 = inlined_call_operand.vmem [shape: f32[1,32], index: 2, kind: input, shape index: {}]   ;;  %s840_s3 = inlined_call_operand.vmem [shape: bf16[32,8], index: 3, kind: input, shape index: {}]   ;;  %s841_s4 = inlined_call_operand.vmem [shape: f32[1,8], index: 4, kind: input, shape index: {}]   ;;  %s842_s5 = inlined_call_operand.vmem [shape: f32[1,8], index: 5, kind: input, shape index: {}]   ;;  %s843_s6 = inlined_call_operand.vmem [shape: f32[1,8], index: 6, kind: input, shape index: {}]   ;;  %s844_s7 = inlined_call_operand.hbm [shape: f32[8,8], index: 7, kind: output, shape index: {}]  }
   0x1 LB: > { %s771_s25 = sadd.s32 4294967295, %s717_s24   ;;  %p586_p0 = scmp.ge.s32.totalorder %s717_s24, 1  ;;  %s717_s24 = sphi %s765_s24, %s18_s24  }
   0x2   : > { %p243_p1 = scmp.lt.s32.totalorder %s717_s24, 4 }
   0x4   : > { %p244_p2 = pnand %p586_p0, %p243_p1 }
   0x5   : > { %p274_p3 = scmp.lt.s32.totalorder (!%p244_p2), %s771_s25, 2  ;;  %s588_s26 = sshll.u32 (!%p244_p2), %s771_s25, 4 }
   0x6   : > { %247 = sbr.rel (%p244_p2) target bundleno = 514 (0x202), region = 48  ;;  %p279_p4 = scmp.lt.s32.totalorder (!%p244_p2), %s588_s26, 47 }
   0x7   : > { %p590_p5 = scmp.ne.s32.totalorder (!%p244_p2), %s771_s25, 0 }
   0xb   : > { %s275_s27 = scalar_select %p274_p3, %s771_s25, 2 }
   0xc   : > { %s846_s26 = smov (!%p279_p4, %s588_s26), 47  ;;  %288 = sbr.rel (%p590_p5) target bundleno = 19 (0x13), region = 52 }
   0xd   : > { %s587_s28 = sshll.u32 %s275_s27, 2  ;;  %s589_s9 = sshll.u32 %s846_s26, 2 }
   0xe   : > { %s781_s8 = scalar_lea.vmem %s837_s0, %s587_s28  ;;  %s786_s12 = scalar_lea.vmem %s838_s1, %s589_s9 }
  0x11   : > { %vm289_vm0 = vcmask 261120   ;;  %v719_v0 = vmov 0.0  }
  0x12   : > { %290 = vst.msk [vmem:[#allocation2] sm:$0xff] %vm289_vm0, %v719_v0 }
  0x13 PF: > { %v671_v1 = vld [vmem:[%s786_s12 + $0x38] sm:$0xff]   ;;  %v720_v2 = vmov 0.0   ;;  %v672_v3 = vld [vmem:[%s786_s12 + $0x30] sm:$0xff]   ;;  %vm721_vm1 = vmmov 0   ;;  %v673_v4 = vld [vmem:[%s786_s12 + $0x28] sm:$0xff]   ;;  %vm398_vm2 = vcmask 261120  }
  0x14   : > { %623 = vmatprep.subr.bf16.mxu0 %v720_v2  ;;  %639 = vmatprep.mubr.msk.bf16.mxu0 %vm721_vm1, %v720_v2  ;;  %v674_v5 = vld [vmem:[%s786_s12 + $0x20] sm:$0xff]   ;;  %v675_v6 = vld [vmem:[%s786_s12 + $0x18] sm:$0xff]   ;;  %v676_v7 = vld [vmem:[%s786_s12 + $0x10] sm:$0xff]   ;;  %p599_p6 = scmp.ne.s32.totalorder %s771_s25, 2 }
  0x15   : > { %624 = vmatpush3.bf16.msra.mxu0 %v671_v1  ;;  %v677_v8 = vld [vmem:[%s786_s12 + $0x8] sm:$0xff]   ;;  %v678_v9 = vld [vmem:[%s786_s12] sm:$0xff]  }
  0x16   : > { %625 = vmatprep.subr.bf16.mxu0 %v720_v2  ;;  %v292_v10 = vld [vmem:[%s781_s8] sm:$0xf] }
  0x19   : > { %626 = vmatpush3.bf16.msra.mxu0 %v672_v3  ;;  %v291_v11 = vld [vmem:[#allocation2] sm:$0xff] }
  0x1a   : > { %627 = vmatprep.subr.bf16.mxu0 %v720_v2 }
  0x1d   : > { %628 = vmatpush3.bf16.msra.mxu0 %v673_v4 }
  0x1e   : > { %629 = vmatprep.subr.bf16.mxu0 %v720_v2 }
  0x21   : > { %630 = vmatpush3.bf16.msra.mxu0 %v674_v5 }
  0x22   : > { %631 = vmatprep.subr.bf16.mxu0 %v720_v2 }
  0x25   : > { %632 = vmatpush3.bf16.msra.mxu0 %v675_v6 }
  0x26   : > { %633 = vmatprep.subr.bf16.mxu0 %v720_v2 }
  0x29   : > { %634 = vmatpush3.bf16.msra.mxu0 %v676_v7 }
  0x2a   : > { %635 = vmatprep.subr.bf16.mxu0 %v720_v2 }
  0x2d   : > { %636 = vmatpush3.bf16.msra.mxu0 %v677_v8 }
  0x2e   : > { %637 = vmatprep.subr.bf16.mxu0 %v720_v2 }
  0x31   : > { %638 = vmatpush3.bf16.msra.mxu0 %v678_v9 }
  0x34   : > { %640 = vmatmul.mubr.bf16.vlgmr.msra.gmra.mxu0 %v292_v10 }
  0xf4   : > { %v391_v12 = vpop.f32.mrf.mxu0 }
  0xf5   : > { %v397_v13 = vadd.f32 %v391_v12, %v291_v11 }
  0xf6   : > { %v641_v14 = vpop.f32.mrf.mxu0  ;;  %403 = sbr.rel (%p599_p6) target bundleno = 499 (0x1f3), region = 56 }
  0xf7   : > { %399 = vst.msk [vmem:[#allocation2] sm:$0xff] %vm398_vm2, %v397_v13 }
  0xf8   : > { %v394_v15 = vpop.f32.mrf.mxu0 }
  0xfa   : > { %v642_v16 = vpop.f32.mrf.mxu0 }
  0xfb   : > { %v679_v17 = vld [vmem:[%s840_s3 + $0x8] sm:$0xff]   ;;  %v722_v18 = vmov 0.0   ;;  %v680_v19 = vld [vmem:[%s840_s3] sm:$0xff]   ;;  %vm723_vm3 = vmmov 0   ;;  %vm483_vm5 = vcmask 64512  }
  0xfc   : > { %643 = vmatprep.subr.bf16.mxu0 %v722_v18  ;;  %647 = vmatprep.mubr.msk.bf16.mxu0 %vm723_vm3, %v722_v18  ;;  %v600_v21 = vld [vmem:[%s839_s2] ss:$0 sm:$0xff] }
  0xfd   : > { %644 = vmatpush3.bf16.msra.mxu0 %v679_v17  ;;  %v601_v26 = vld [vmem:[%s841_s4] ss:$0 sm:$0xff] }
  0xfe   : > { %v404_v20 = vld [vmem:[#allocation2] sm:$0xff]  ;;  %645 = vmatprep.subr.bf16.mxu0 %v722_v18 }
  0xff   : > { %v412_v22 = vadd.f32 %v600_v21, %v404_v20  ;;  %v605_v54 = vld [vmem:[%s842_s5] ss:$0 sm:$0xff] }
 0x100   : > { %v606_v56 = vld [vmem:[%s843_s6] ss:$0 sm:$0xff] }
 0x101   : > { %vm413_vm4 = vcmp.gt.f32.partialorder %v412_v22, 0.0  ;;  %v414_v23 = vmul.f32 0.01, %v412_v22  ;;  %646 = vmatpush3.bf16.msra.mxu0 %v680_v19 }
 0x103   : > { %v415_v24 = vsel %vm413_vm4, %v412_v22, %v414_v23 }
 0x104   : > { %v416_v25 = vpack.c.bf16 %v415_v24, %v415_v24 }
 0x106   : > { %648 = vmatmul.mubr.msk.bf16.vlgmr.msra.gmra.mxu0 %vm398_vm2, %v416_v25 }
 0x1c6   : > { %v477_v27 = vpop.f32.mrf.mxu0 }
 0x1c7   : > { %v478_v28 = vadd.f32 %v601_v26, %v477_v27 }
 0x1c8   : > { %v649_v29 = vpop.f32.mrf.mxu0 }
 0x1c9   : > { %v484_v30 = vsel %vm483_vm5, %v478_v28, 0.0  ;;  %v493_v31 = vmul.f32 %v478_v28, %v478_v28 }
 0x1ca   : > { %v485_v32 = vrot.slane %v484_v30, 4  ;;  %v480_v33 = vpop.f32.mrf.mxu0 }
 0x1cb   : > { %v494_v34 = vsel %vm483_vm5, %v493_v31, 0.0 }
 0x1cc   : > { %v486_v35 = vadd.f32 %v485_v32, %v484_v30  ;;  %v495_v36 = vrot.slane %v494_v34, 4  ;;  %v650_v37 = vpop.f32.mrf.mxu0 }
 0x1ce   : > { %v487_v38 = vrot.slane %v486_v35, 2  ;;  %v496_v39 = vadd.f32 %v495_v36, %v494_v34 }
 0x1d0   : > { %v488_v40 = vadd.f32 %v487_v38, %v486_v35  ;;  %v497_v41 = vrot.slane %v496_v39, 2 }
 0x1d2   : > { %v489_v42 = vrot.slane %v488_v40, 1  ;;  %v498_v43 = vadd.f32 %v497_v41, %v496_v39 }
 0x1d4   : > { %v490_v44 = vadd.f32 %v489_v42, %v488_v40  ;;  %v499_v45 = vrot.slane %v498_v43, 1 }
 0x1d6   : > { %v492_v46 = vmul.f32 0.125, %v490_v44  ;;  %v500_v47 = vadd.f32 %v499_v45, %v498_v43 }
 0x1d8   : > { %v501_v48 = vmul.f32 0.125, %v500_v47  ;;  %v502_v49 = vmul.f32 %v492_v46, %v492_v46  ;;  %v504_v52 = vsub.f32 %v478_v28, %v492_v46 }
 0x1da   : > { %v503_v50 = vsub.f32 %v501_v48, %v502_v49 }
 0x1dc   : > { %v505_v51 = vadd.f32 1e-05, %v503_v50 }
 0x1de   : > { %681 = vrsqrt.f32 %v505_v51 }
 0x1eb   : > { %v682_v53 = vpop.eup %681 }
 0x1ec   : > { %v507_v55 = vmul.f32 %v682_v53, %v504_v52 }
 0x1ee   : > { %v515_v57 = vmul.f32 %v605_v54, %v507_v55 }
 0x1f0   : > { %v523_v58 = vadd.f32 %v606_v56, %v515_v57 }
 0x1f2   : > { %524 = vst.msk [vmem:[#allocation3] sm:$0xff] %vm483_vm5, %v523_v58 }
 0x1f3 PF: > { %p655_p7 = scmp.eq.s32.totalorder %s771_s25, 2  ;;  %s724_s27 = smov [#allocation3]  }
 0x1f4   : > { %s532_s28 = sshll.u32 %s724_s27, 4  ;;  %s533_s28 = int_to_ptr.vmem [resolvable:$true] %s532_s28 }
 0x1f5   : > { %s683_s29 = scalar_lea.vmem %s533_s28, 128  ;;  %p690_p11 = scmp.lt.s32.totalorder %s533_s28, %s533_s28 }
 0x1f6   : > { %p684_p8 = scmp.ne.s32.totalorder %s533_s28, %s683_s29  ;;  %p691_p12 = scmp.lt.s32.totalorder %s683_s29, %s683_s29 }
 0x1f8   : > { %p685_p9 = pnand %p684_p8, %p655_p7  ;;  %p692_p13 = por %p691_p12, %p690_p11 }
 0x1fa   : > { %p686_p10 = pneg %p685_p9 }
 0x1fc   : > { %p693_p0 = pnand %p692_p13, %p686_p10 }
 0x1fe   : > { %696 = shalt.err (!%p693_p0)
}
 0x1ff   : > { %652 = dma.vmem_to_hbm [thread:$0]  (%p655_p7), %s533_s28, 128, %s844_s7, [#allocation4]  }
 0x200   : > { %712 = dma.done.wait (%p655_p7), [#allocation4], 128  }
 0x201   : > { %714 = vsyncadd (%p655_p7), [#allocation4], 4294967168 }
 0x202 PF: > { %s18_s24 = sadd.s32 1, %s717_s24  }
 0x203   : > { %p15_p1 = scmp.ge.s32.totalorder %s18_s24, 5  }
 0x205   :  { %17 = sbr.rel (!%p15_p1) target bundleno = 1 (0x1), region = 86 }
 0x20a   :  { %545 = vsyncpa [#allocation4], 1 }
 0x20b   :  { %547 = vsyncpa [#allocation4 + $0x1], 1 }

</bundles_post_ra>
